<compile_context>
chip_gen: v7x
topology: tpu7x:2x2x1
jax: 0.10.0
libtpu: 0.0.40
codegen_flags: <defaults>
</compile_context>

<pallas_src>
import jax
import jax.numpy as jnp
from jax.experimental import pallas as pl
from jax.experimental.pallas import tpu as pltpu


_UNSET = object()


def _cdiv(a, b):
    return -(-a // b)


def _round_up(x, m):
    return ((x + m - 1) // m) * m


def _tpu_vmem_and_cores():
    """Best-effort hardware query; conservative fallbacks keep every generation safe."""
    vmem_cap = 64 * 1024 * 1024          # conservative default: v7x per-core VMEM
    cores = 1
    try:
        cap = getattr(pltpu.get_tpu_info(), "vmem_capacity_bytes", None)
        if cap:
            vmem_cap = int(cap)
    except Exception:
        pass
    try:
        kind = jax.devices()[0].device_kind.lower()
        if "v7" in kind or "7x" in kind:
            cores = 2                    # two TensorCores per chip on v7x
    except Exception:
        pass
    return vmem_cap, cores


# ---------------------------------------------------------------------------
# Fused multi-MLP Pallas kernel
# ---------------------------------------------------------------------------
def _make_fused_mlp_kernel(layer_counts, relu_flags):
    """Kernel over one row tile of each MLP's input.

    Ref order: (x_0..x_{M-1}, W/b pairs of MLP 0, ..., W/b pairs of MLP M-1,
                out_0..out_{M-1}).
    """
    n_mlps = len(layer_counts)

    def kernel(*refs):
        x_refs = refs[:n_mlps]
        o_refs = refs[len(refs) - n_mlps:]
        p_refs = refs[n_mlps:len(refs) - n_mlps]

        off = 0
        for m in range(n_mlps):
            h = x_refs[m][...]
            for l in range(layer_counts[m]):
                w = p_refs[off][...]
                b = p_refs[off + 1][...]              # (1, d_out), float32
                off += 2
                h = jnp.dot(h, w, preferred_element_type=jnp.float32)
                h = h + b.astype(jnp.float32)
                if relu_flags[m][l]:
                    h = jnp.maximum(h, 0.0)
                if l + 1 < layer_counts[m]:
                    # Keep MXU operands in the streaming dtype (bf16 path); f32 no-op.
                    h = h.astype(w.dtype)
            o_refs[m][...] = h.astype(o_refs[m].dtype)

    return kernel


def _fused_mlps_forward(xs, params_list, *, compute_dtype=jnp.bfloat16,
                        target_tile_bytes=4 * 1024 * 1024, steps_per_core=2):
    """Runs several independent MLPs in ONE pallas_call over a shared row grid.

    xs:           list of (N_i, d_in_i) arrays (arbitrary N_i — no pad / no slice).
    params_list:  list (per MLP) of [(W, b), ...] with W:(d_in_l, d_out_l), b:(1, d_out_l).
    compute_dtype: streaming dtype for x and W (default bf16); accumulation stays f32
                   and outputs keep the original input dtype.  None -> exact f32 path.
    """
    assert len(xs) == len(params_list) and len(xs) > 0

    ns = [int(x.shape[0]) for x in xs]
    out_dtypes = [x.dtype for x in xs]

    if compute_dtype is not None:
        compute_dtype = jnp.dtype(compute_dtype)
        # Weights are normally pre-cast at init; the x cast is a no-op when the upstream
        # producer already emits compute_dtype (intended deployment) and otherwise fuses
        # with the producing XLA op.
        xs = [x if x.dtype == compute_dtype else x.astype(compute_dtype) for x in xs]
        params_list = [[(w if w.dtype == compute_dtype else w.astype(compute_dtype), b)
                        for (w, b) in ps] for ps in params_list]

    d_ins = [int(x.shape[1]) for x in xs]
    d_outs = [int(ps[-1][0].shape[1]) for ps in params_list]
    in_sizes = [x.dtype.itemsize for x in xs]
    out_sizes = [jnp.dtype(dt).itemsize for dt in out_dtypes]

    # (16,128) packed rows for sub-32-bit streaming, (8,128) otherwise.
    row_align = 16 if (compute_dtype is not None and compute_dtype.itemsize < 4) else 8

    vmem_cap, cores = _tpu_vmem_and_cores()
    vmem_budget = int(vmem_cap * 0.70)           # leave headroom for compiler scratch
    min_grid = max(2, steps_per_core * cores)    # >=2 steps per TensorCore

    # --- grid: byte-budget tiling (~4 MiB streamed bytes per tile per MLP) ----------
    grid_n = min_grid
    for n, d_in, d_out, isz, osz in zip(ns, d_ins, d_outs, in_sizes, out_sizes):
        row_bytes = d_in * isz + d_out * osz
        tm_budget = max(row_align, target_tile_bytes // max(row_bytes, 1))
        grid_n = max(grid_n, _cdiv(n, tm_budget))

    def _tiles(g):
        return [_round_up(max(1, _cdiv(n, g)), row_align) for n in ns]

    def _vmem_need(tms_):
        tot = 0
        for tm, x, d_out, osz, ps in zip(tms_, xs, d_outs, out_sizes, params_list):
            widths = [x.shape[1]] + [w.shape[1] for (w, _) in ps]
            tot += 2 * tm * x.shape[1] * x.dtype.itemsize     # x tile, double-buffered
            tot += 2 * tm * d_out * osz                       # out tile, double-buffered
            tot += 3 * tm * max(widths) * 4                   # f32 intermediates headroom
            for (w, b) in ps:
                tot += 2 * (w.size * w.dtype.itemsize + b.size * b.dtype.itemsize)
        return tot

    tms = _tiles(grid_n)
    for _ in range(16):                       # grow grid until tiles fit in VMEM budget
        need = _vmem_need(tms)
        if need <= vmem_budget:
            break
        new_grid = max(grid_n + 1, _cdiv(grid_n * need, vmem_budget))
        new_tms = _tiles(new_grid)
        if new_tms == tms:                    # tiles can't shrink further
            grid_n = new_grid
            break
        grid_n, tms = new_grid, new_tms

    layer_counts = [len(ps) for ps in params_list]
    relu_flags = [tuple(int(w.shape[1]) != 1 for (w, _) in ps) for ps in params_list]
    kernel = _make_fused_mlp_kernel(layer_counts, relu_flags)

    # --- inputs: x tiles (clamped index_map), then resident weights/biases ----------
    in_specs, flat_inputs = [], []
    for x, tm, n in zip(xs, tms, ns):
        last_blk = _cdiv(n, tm) - 1
        in_specs.append(pl.BlockSpec(
            (tm, x.shape[1]), lambda i, lb=last_blk: (jnp.minimum(i, lb), 0)))
        flat_inputs.append(x)
    for ps in params_list:
        for (w, b) in ps:
            in_specs.append(pl.BlockSpec(w.shape, lambda i: (0, 0)))
            in_specs.append(pl.BlockSpec(b.shape, lambda i: (0, 0)))
            flat_inputs.extend([w, b])

    # --- outputs at the TRUE row count; Pallas masks the partial last block ---------
    out_specs, out_shapes = [], []
    for tm, n, d_out, dt in zip(tms, ns, d_outs, out_dtypes):
        last_blk = _cdiv(n, tm) - 1
        out_specs.append(pl.BlockSpec(
            (tm, d_out), lambda i, lb=last_blk: (jnp.minimum(i, lb), 0)))
        out_shapes.append(jax.ShapeDtypeStruct((n, d_out), dt))

    # --- advisory cost estimate ------------------------------------------------------
    flops, bytes_accessed = 0, 0
    for n, x, ps, d_out, osz in zip(ns, xs, params_list, d_outs, out_sizes):
        bytes_accessed += n * int(x.shape[1]) * x.dtype.itemsize + n * d_out * osz
        for (w, b) in ps:
            flops += 2 * n * int(w.shape[0]) * int(w.shape[1])
            bytes_accessed += int(w.size) * w.dtype.itemsize + int(b.size) * b.dtype.itemsize

    vmem_limit = min(int(vmem_cap * 3) // 4, 112 * 1024 * 1024)   # generation-aware cap

    outs = pl.pallas_call(
        kernel,
        out_shape=tuple(out_shapes),
        grid_spec=pltpu.PrefetchScalarGridSpec(
            num_scalar_prefetch=0,
            grid=(grid_n,),
            in_specs=in_specs,
            out_specs=out_specs,
        ),
        compiler_params=pltpu.CompilerParams(
            dimension_semantics=("parallel",),
            vmem_limit_bytes=vmem_limit,
        ),
        cost_estimate=pl.CostEstimate(flops=int(flops), transcendentals=0,
                                      bytes_accessed=int(bytes_accessed)),
    )(*flat_inputs)

    return list(outs) if isinstance(outs, (tuple, list)) else [outs]


# ---------------------------------------------------------------------------
# Parameter construction (deterministic, in-script)
# ---------------------------------------------------------------------------
def _init_mlp_params(key, input_dim, fc_dims):
    """Kaiming-uniform-ish deterministic init; W stored as (in, out)."""
    params = []
    d_in = input_dim
    for d_out in fc_dims:
        key, kw, kb = jax.random.split(key, 3)
        bound = 1.0 / jnp.sqrt(jnp.float32(d_in))
        w = jax.random.uniform(kw, (d_in, d_out), jnp.float32, -bound, bound)
        b = jax.random.uniform(kb, (1, d_out), jnp.float32, -bound, bound)
        params.append((w, b))
        d_in = d_out
    return params


# ---------------------------------------------------------------------------
# MLPGraphIndependent
# ---------------------------------------------------------------------------
class MLPGraphIndependentPallas:
    def __init__(self, key, edge_in_dim=None, node_in_dim=None,
                 edge_out_dim=None, node_out_dim=None,
                 node_dims=None, edge_dims=None,
                 dropout_p=None, use_batchnorm=None,
                 compute_dtype=jnp.bfloat16):
        # TODO(synk): use_batchnorm/dropout branches not implemented (they are unset in
        # this config; forward-time dropout is identity anyway).
        self.compute_dtype = compute_dtype
        k_node, k_edge = jax.random.split(key)
        self.node_params = (_init_mlp_params(k_node, node_in_dim,
                                             list(node_dims) + [node_out_dim])
                            if node_in_dim is not None else None)
        self.edge_params = (_init_mlp_params(k_edge, edge_in_dim,
                                             list(edge_dims) + [edge_out_dim])
                            if edge_in_dim is not None else None)
        # Pre-cast streaming copies of the weights ONCE (biases stay f32) so the bf16
        # path never pays a per-call convert pass over the parameters.
        self._stream_params = {}
        if compute_dtype is not None:
            for name, ps in (("node", self.node_params), ("edge", self.edge_params)):
                if ps is not None:
                    self._stream_params[name] = [(w.astype(compute_dtype), b)
                                                 for (w, b) in ps]

    def _pick_params(self, name, ps, cd):
        if cd is None:
            return ps
        if cd == self.compute_dtype and name in self._stream_params:
            return self._stream_params[name]
        return [(w.astype(cd), b) for (w, b) in ps]

    def __call__(self, edge_feats=None, nodes_feats=None, compute_dtype=_UNSET):
        cd = self.compute_dtype if compute_dtype is _UNSET else compute_dtype
        xs, params_list, slots = [], [], []
        if self.edge_params is not None:
            xs.append(edge_feats)
            params_list.append(self._pick_params("edge", self.edge_params, cd))
            slots.append("edge")
        if self.node_params is not None:
            xs.append(nodes_feats)
            params_list.append(self._pick_params("node", self.node_params, cd))
            slots.append("node")

        outs = _fused_mlps_forward(xs, params_list, compute_dtype=cd) if xs else []
        out_map = dict(zip(slots, outs))
        return (out_map.get("edge", edge_feats), out_map.get("node", nodes_feats))


# ---------------------------------------------------------------------------
# Pure-JAX reference for correctness checking
# ---------------------------------------------------------------------------
def _mlp_ref(x, params, compute_dtype=None):
    h = x if compute_dtype is None else x.astype(compute_dtype)
    nl = len(params)
    for idx, (w, b) in enumerate(params):
        wc = w if compute_dtype is None else w.astype(compute_dtype)
        h = jnp.dot(h, wc, preferred_element_type=jnp.float32) + b
        if w.shape[1] != 1:
            h = jnp.maximum(h, 0.0)
        if compute_dtype is not None and idx + 1 < nl:
            h = h.astype(compute_dtype)
    return h.astype(x.dtype)


if __name__ == "__main__":
    key = jax.random.PRNGKey(0)
    k_params, k_edge_x, k_node_x = jax.random.split(key, 3)

    # Small, shape-consistent config (mirrors the MOT encoder structure).
    # Row counts are deliberately NOT multiples of 8 to exercise the partial-last-block
    # (no-pad / no-slice) path.
    edge_in_dim, edge_dims, edge_out_dim = 8, [16, 16], 8
    node_in_dim, node_dims, node_out_dim = 32, [64], 16
    num_edges, num_nodes = 250, 130

    model = MLPGraphIndependentPallas(
        k_params,
        edge_in_dim=edge_in_dim, node_in_dim=node_in_dim,
        edge_out_dim=edge_out_dim, node_out_dim=node_out_dim,
        node_dims=node_dims, edge_dims=edge_dims,
        dropout_p=None, use_batchnorm=None,
        compute_dtype=jnp.bfloat16,            # review: bf16 streaming default
    )

    edge_feats = jax.random.normal(k_edge_x, (num_edges, edge_in_dim), jnp.float32)
    node_feats = jax.random.normal(k_node_x, (num_nodes, node_in_dim), jnp.float32)

    # Exact float32 path (bit-level semantics of the PyTorch module).
    out_edge, out_node = model(edge_feats=edge_feats, nodes_feats=node_feats,
                               compute_dtype=None)
    out_edge = jax.block_until_ready(out_edge)
    out_node = jax.block_until_ready(out_node)

    ref_edge = _mlp_ref(edge_feats, model.edge_params)
    ref_node = _mlp_ref(node_feats, model.node_params)
    assert out_edge.shape == (num_edges, edge_out_dim)
    assert out_node.shape == (num_nodes, node_out_dim)
    assert out_edge.dtype == edge_feats.dtype and out_node.dtype == node_feats.dtype
    assert jnp.allclose(out_edge, ref_edge, atol=1e-5, rtol=1e-5)
    assert jnp.allclose(out_node, ref_node, atol=1e-5, rtol=1e-5)

    # Default path: bf16 streaming (halves HBM x/W bytes), f32 MXU accumulation.
    out_edge_bf, out_node_bf = model(edge_feats=edge_feats, nodes_feats=node_feats)
    out_edge_bf = jax.block_until_ready(out_edge_bf)
    out_node_bf = jax.block_until_ready(out_node_bf)
    ref_edge_bf = _mlp_ref(edge_feats, model.edge_params, compute_dtype=jnp.bfloat16)
    ref_node_bf = _mlp_ref(node_feats, model.node_params, compute_dtype=jnp.bfloat16)
    assert jnp.allclose(out_edge_bf, ref_edge_bf, atol=5e-2, rtol=5e-2)
    assert jnp.allclose(out_node_bf, ref_node_bf, atol=5e-2, rtol=5e-2)

    print("KERNEL_OK")
</pallas_src>

<mosaic_0001>
module attributes {stable_mosaic.version = 11 : i64} {
  func.func @kernel(%arg0: i32, %arg1: memref<128x8xf32, #tpu.memory_space<vmem>>, %arg2: memref<72x32xf32, #tpu.memory_space<vmem>>, %arg3: memref<8x16xf32, #tpu.memory_space<vmem>>, %arg4: memref<1x16xf32, #tpu.memory_space<vmem>>, %arg5: memref<16x16xf32, #tpu.memory_space<vmem>>, %arg6: memref<1x16xf32, #tpu.memory_space<vmem>>, %arg7: memref<16x8xf32, #tpu.memory_space<vmem>>, %arg8: memref<1x8xf32, #tpu.memory_space<vmem>>, %arg9: memref<32x64xf32, #tpu.memory_space<vmem>>, %arg10: memref<1x64xf32, #tpu.memory_space<vmem>>, %arg11: memref<64x16xf32, #tpu.memory_space<vmem>>, %arg12: memref<1x16xf32, #tpu.memory_space<vmem>>, %arg13: memref<128x8xf32, #tpu.memory_space<vmem>>, %arg14: memref<72x16xf32, #tpu.memory_space<vmem>>) attributes {dimension_semantics = [#tpu.dimension_semantics<parallel>], iteration_bounds = array<i64: 2>, scalar_prefetch = 0 : i64, scratch_operands = 0 : i64, tpu.core_type = #tpu.core_type<tc>, window_params = [{transform_indices = @transform_0, window_bounds = array<i64: 128, 8>}, {transform_indices = @transform_1, window_bounds = array<i64: 72, 32>}, {pipeline_mode = #tpu.pipeline_mode<synchronous>, transform_indices = @transform_2, window_bounds = array<i64: 8, 16>}, {pipeline_mode = #tpu.pipeline_mode<synchronous>, transform_indices = @transform_3, window_bounds = array<i64: 1, 16>}, {pipeline_mode = #tpu.pipeline_mode<synchronous>, transform_indices = @transform_4, window_bounds = array<i64: 16, 16>}, {pipeline_mode = #tpu.pipeline_mode<synchronous>, transform_indices = @transform_5, window_bounds = array<i64: 1, 16>}, {pipeline_mode = #tpu.pipeline_mode<synchronous>, transform_indices = @transform_6, window_bounds = array<i64: 16, 8>}, {pipeline_mode = #tpu.pipeline_mode<synchronous>, transform_indices = @transform_7, window_bounds = array<i64: 1, 8>}, {pipeline_mode = #tpu.pipeline_mode<synchronous>, transform_indices = @transform_8, window_bounds = array<i64: 32, 64>}, {pipeline_mode = #tpu.pipeline_mode<synchronous>, transform_indices = @transform_9, window_bounds = array<i64: 1, 64>}, {pipeline_mode = #tpu.pipeline_mode<synchronous>, transform_indices = @transform_10, window_bounds = array<i64: 64, 16>}, {pipeline_mode = #tpu.pipeline_mode<synchronous>, transform_indices = @transform_11, window_bounds = array<i64: 1, 16>}, {transform_indices = @transform_12, window_bounds = array<i64: 128, 8>}, {transform_indices = @transform_13, window_bounds = array<i64: 72, 16>}]} {
    %c0 = arith.constant 0 : index
    %c0_0 = arith.constant 0 : index
    %0 = vector.load %arg1[%c0, %c0_0] : memref<128x8xf32, #tpu.memory_space<vmem>>, vector<128x8xf32>
    %c0_1 = arith.constant 0 : index
    %c0_2 = arith.constant 0 : index
    %1 = vector.load %arg3[%c0_1, %c0_2] : memref<8x16xf32, #tpu.memory_space<vmem>>, vector<8x16xf32>
    %c0_3 = arith.constant 0 : index
    %c0_4 = arith.constant 0 : index
    %2 = vector.load %arg4[%c0_3, %c0_4] : memref<1x16xf32, #tpu.memory_space<vmem>>, vector<1x16xf32>
    %cst = arith.constant dense<0.000000e+00> : vector<128x16xf32>
    %3 = tpu.matmul %0, %1, %cst {dimension_numbers = #tpu.dot_dimension_numbers<[1], [0], [0], [1], [0, 0, 1, 1], [], []>} : vector<128x8xf32>, vector<8x16xf32>, vector<128x16xf32> -> vector<128x16xf32>
    %4 = vector.broadcast %2 : vector<1x16xf32> to vector<128x16xf32>
    %5 = arith.addf %3, %4 : vector<128x16xf32>
    %cst_5 = arith.constant 0.000000e+00 : f32
    %6 = vector.broadcast %cst_5 : f32 to vector<128x16xf32>
    %7 = arith.maximumf %5, %6 : vector<128x16xf32>
    %c0_6 = arith.constant 0 : index
    %c0_7 = arith.constant 0 : index
    %8 = vector.load %arg5[%c0_6, %c0_7] : memref<16x16xf32, #tpu.memory_space<vmem>>, vector<16x16xf32>
    %c0_8 = arith.constant 0 : index
    %c0_9 = arith.constant 0 : index
    %9 = vector.load %arg6[%c0_8, %c0_9] : memref<1x16xf32, #tpu.memory_space<vmem>>, vector<1x16xf32>
    %cst_10 = arith.constant dense<0.000000e+00> : vector<128x16xf32>
    %10 = tpu.matmul %7, %8, %cst_10 {dimension_numbers = #tpu.dot_dimension_numbers<[1], [0], [0], [1], [0, 0, 1, 1], [], []>} : vector<128x16xf32>, vector<16x16xf32>, vector<128x16xf32> -> vector<128x16xf32>
    %11 = vector.broadcast %9 : vector<1x16xf32> to vector<128x16xf32>
    %12 = arith.addf %10, %11 : vector<128x16xf32>
    %cst_11 = arith.constant 0.000000e+00 : f32
    %13 = vector.broadcast %cst_11 : f32 to vector<128x16xf32>
    %14 = arith.maximumf %12, %13 : vector<128x16xf32>
    %c0_12 = arith.constant 0 : index
    %c0_13 = arith.constant 0 : index
    %15 = vector.load %arg7[%c0_12, %c0_13] : memref<16x8xf32, #tpu.memory_space<vmem>>, vector<16x8xf32>
    %c0_14 = arith.constant 0 : index
    %c0_15 = arith.constant 0 : index
    %16 = vector.load %arg8[%c0_14, %c0_15] : memref<1x8xf32, #tpu.memory_space<vmem>>, vector<1x8xf32>
    %cst_16 = arith.constant dense<0.000000e+00> : vector<128x8xf32>
    %17 = tpu.matmul %14, %15, %cst_16 {dimension_numbers = #tpu.dot_dimension_numbers<[1], [0], [0], [1], [0, 0, 1, 1], [], []>} : vector<128x16xf32>, vector<16x8xf32>, vector<128x8xf32> -> vector<128x8xf32>
    %18 = vector.broadcast %16 : vector<1x8xf32> to vector<128x8xf32>
    %19 = arith.addf %17, %18 : vector<128x8xf32>
    %cst_17 = arith.constant 0.000000e+00 : f32
    %20 = vector.broadcast %cst_17 : f32 to vector<128x8xf32>
    %21 = arith.maximumf %19, %20 : vector<128x8xf32>
    %c0_18 = arith.constant 0 : index
    %c0_19 = arith.constant 0 : index
    %22 = vector.load %arg13[%c0_18, %c0_19] : memref<128x8xf32, #tpu.memory_space<vmem>>, vector<128x8xf32>
    tpu.vector_store %arg13[%c0_18, %c0_19], %21 {strides = array<i32>} : memref<128x8xf32, #tpu.memory_space<vmem>>, vector<128x8xf32>,
    %c0_20 = arith.constant 0 : index
    %c0_21 = arith.constant 0 : index
    %23 = vector.load %arg2[%c0_20, %c0_21] : memref<72x32xf32, #tpu.memory_space<vmem>>, vector<72x32xf32>
    %c0_22 = arith.constant 0 : index
    %c0_23 = arith.constant 0 : index
    %24 = vector.load %arg9[%c0_22, %c0_23] : memref<32x64xf32, #tpu.memory_space<vmem>>, vector<32x64xf32>
    %c0_24 = arith.constant 0 : index
    %c0_25 = arith.constant 0 : index
    %25 = vector.load %arg10[%c0_24, %c0_25] : memref<1x64xf32, #tpu.memory_space<vmem>>, vector<1x64xf32>
    %cst_26 = arith.constant dense<0.000000e+00> : vector<72x64xf32>
    %26 = tpu.matmul %23, %24, %cst_26 {dimension_numbers = #tpu.dot_dimension_numbers<[1], [0], [0], [1], [0, 0, 1, 1], [], []>} : vector<72x32xf32>, vector<32x64xf32>, vector<72x64xf32> -> vector<72x64xf32>
    %27 = vector.broadcast %25 : vector<1x64xf32> to vector<72x64xf32>
    %28 = arith.addf %26, %27 : vector<72x64xf32>
    %cst_27 = arith.constant 0.000000e+00 : f32
    %29 = vector.broadcast %cst_27 : f32 to vector<72x64xf32>
    %30 = arith.maximumf %28, %29 : vector<72x64xf32>
    %c0_28 = arith.constant 0 : index
    %c0_29 = arith.constant 0 : index
    %31 = vector.load %arg11[%c0_28, %c0_29] : memref<64x16xf32, #tpu.memory_space<vmem>>, vector<64x16xf32>
    %c0_30 = arith.constant 0 : index
    %c0_31 = arith.constant 0 : index
    %32 = vector.load %arg12[%c0_30, %c0_31] : memref<1x16xf32, #tpu.memory_space<vmem>>, vector<1x16xf32>
    %cst_32 = arith.constant dense<0.000000e+00> : vector<72x16xf32>
    %33 = tpu.matmul %30, %31, %cst_32 {dimension_numbers = #tpu.dot_dimension_numbers<[1], [0], [0], [1], [0, 0, 1, 1], [], []>} : vector<72x64xf32>, vector<64x16xf32>, vector<72x16xf32> -> vector<72x16xf32>
    %34 = vector.broadcast %32 : vector<1x16xf32> to vector<72x16xf32>
    %35 = arith.addf %33, %34 : vector<72x16xf32>
    %cst_33 = arith.constant 0.000000e+00 : f32
    %36 = vector.broadcast %cst_33 : f32 to vector<72x16xf32>
    %37 = arith.maximumf %35, %36 : vector<72x16xf32>
    %c0_34 = arith.constant 0 : index
    %c0_35 = arith.constant 0 : index
    %38 = vector.load %arg14[%c0_34, %c0_35] : memref<72x16xf32, #tpu.memory_space<vmem>>, vector<72x16xf32>
    tpu.vector_store %arg14[%c0_34, %c0_35], %37 {strides = array<i32>} : memref<72x16xf32, #tpu.memory_space<vmem>>, vector<72x16xf32>,
    return
  }
  func.func @transform_0(%arg0: i32) -> (i32, i32) {
    %c1_i32 = arith.constant 1 : i32
    %0 = arith.minsi %arg0, %c1_i32 : i32
    %c0_i32 = arith.constant 0 : i32
    %c0_i32_0 = arith.constant 0 : i32
    return %0, %c0_i32 : i32, i32
  }
  func.func @transform_1(%arg0: i32) -> (i32, i32) {
    %c1_i32 = arith.constant 1 : i32
    %0 = arith.minsi %arg0, %c1_i32 : i32
    %c0_i32 = arith.constant 0 : i32
    %c0_i32_0 = arith.constant 0 : i32
    return %0, %c0_i32 : i32, i32
  }
  func.func @transform_2(%arg0: i32) -> (i32, i32) {
    %c0_i32 = arith.constant 0 : i32
    %c0_i32_0 = arith.constant 0 : i32
    %c0_i32_1 = arith.constant 0 : i32
    return %c0_i32, %c0_i32_0 : i32, i32
  }
  func.func @transform_3(%arg0: i32) -> (i32, i32) {
    %c0_i32 = arith.constant 0 : i32
    %c0_i32_0 = arith.constant 0 : i32
    %c0_i32_1 = arith.constant 0 : i32
    return %c0_i32, %c0_i32_0 : i32, i32
  }
  func.func @transform_4(%arg0: i32) -> (i32, i32) {
    %c0_i32 = arith.constant 0 : i32
    %c0_i32_0 = arith.constant 0 : i32
    %c0_i32_1 = arith.constant 0 : i32
    return %c0_i32, %c0_i32_0 : i32, i32
  }
  func.func @transform_5(%arg0: i32) -> (i32, i32) {
    %c0_i32 = arith.constant 0 : i32
    %c0_i32_0 = arith.constant 0 : i32
    %c0_i32_1 = arith.constant 0 : i32
    return %c0_i32, %c0_i32_0 : i32, i32
  }
  func.func @transform_6(%arg0: i32) -> (i32, i32) {
    %c0_i32 = arith.constant 0 : i32
    %c0_i32_0 = arith.constant 0 : i32
    %c0_i32_1 = arith.constant 0 : i32
    return %c0_i32, %c0_i32_0 : i32, i32
  }
  func.func @transform_7(%arg0: i32) -> (i32, i32) {
    %c0_i32 = arith.constant 0 : i32
    %c0_i32_0 = arith.constant 0 : i32
    %c0_i32_1 = arith.constant 0 : i32
    return %c0_i32, %c0_i32_0 : i32, i32
  }
  func.func @transform_8(%arg0: i32) -> (i32, i32) {
    %c0_i32 = arith.constant 0 : i32
    %c0_i32_0 = arith.constant 0 : i32
    %c0_i32_1 = arith.constant 0 : i32
    return %c0_i32, %c0_i32_0 : i32, i32
  }
  func.func @transform_9(%arg0: i32) -> (i32, i32) {
    %c0_i32 = arith.constant 0 : i32
    %c0_i32_0 = arith.constant 0 : i32
    %c0_i32_1 = arith.constant 0 : i32
    return %c0_i32, %c0_i32_0 : i32, i32
  }
  func.func @transform_10(%arg0: i32) -> (i32, i32) {
    %c0_i32 = arith.constant 0 : i32
    %c0_i32_0 = arith.constant 0 : i32
    %c0_i32_1 = arith.constant 0 : i32
    return %c0_i32, %c0_i32_0 : i32, i32
  }
  func.func @transform_11(%arg0: i32) -> (i32, i32) {
    %c0_i32 = arith.constant 0 : i32
    %c0_i32_0 = arith.constant 0 : i32
    %c0_i32_1 = arith.constant 0 : i32
    return %c0_i32, %c0_i32_0 : i32, i32
  }
  func.func @transform_12(%arg0: i32) -> (i32, i32) {
    %c1_i32 = arith.constant 1 : i32
    %0 = arith.minsi %arg0, %c1_i32 : i32
    %c0_i32 = arith.constant 0 : i32
    %c0_i32_0 = arith.constant 0 : i32
    return %0, %c0_i32 : i32, i32
  }
  func.func @transform_13(%arg0: i32) -> (i32, i32) {
    %c1_i32 = arith.constant 1 : i32
    %0 = arith.minsi %arg0, %c1_i32 : i32
    %c0_i32 = arith.constant 0 : i32
    %c0_i32_0 = arith.constant 0 : i32
    return %0, %c0_i32 : i32, i32
  }
}

</mosaic_0001>

<bundles_post_ra>
// kernel: tpu_custom_call.1
= control target key start
LH: loop header
LB: loop body
LE: loop exit
PB: predicated region body
PF: predicated region fallthrough
CT: control target
= control target key end

     0   :  { %s2885_s0 = inlined_call_operand.vmem [shape: f32[250,8], index: 0, kind: input, shape index: {}]   ;;  %s2886_s1 = inlined_call_operand.vmem [shape: f32[130,32], index: 1, kind: input, shape index: {}]   ;;  %s2887_s2 = inlined_call_operand.vmem [shape: f32[8,16], index: 2, kind: input, shape index: {}]   ;;  %s2888_s3 = inlined_call_operand.vmem [shape: f32[1,16], index: 3, kind: input, shape index: {}]   ;;  %s2889_s4 = inlined_call_operand.vmem [shape: f32[16,16], index: 4, kind: input, shape index: {}]   ;;  %s2890_s5 = inlined_call_operand.vmem [shape: f32[1,16], index: 5, kind: input, shape index: {}]   ;;  %s2891_s6 = inlined_call_operand.vmem [shape: f32[16,8], index: 6, kind: input, shape index: {}]   ;;  %s2892_s7 = inlined_call_operand.vmem [shape: f32[1,8], index: 7, kind: input, shape index: {}]   ;;  %s2893_s8 = inlined_call_operand.vmem [shape: f32[32,64], index: 8, kind: input, shape index: {}]   ;;  %s2894_s9 = inlined_call_operand.vmem [shape: f32[1,64], index: 9, kind: input, shape index: {}]   ;;  %s2895_s10 = inlined_call_operand.vmem [shape: f32[64,16], index: 10, kind: input, shape index: {}]   ;;  %s2896_s11 = inlined_call_operand.vmem [shape: f32[1,16], index: 11, kind: input, shape index: {}]   ;;  %s2897_s12 = inlined_call_operand.vmem [shape: f32[250,8], index: 12, kind: output, shape index: {0}]   ;;  %s2898_s13 = inlined_call_operand.vmem [shape: f32[130,16], index: 13, kind: output, shape index: {1}]  }
   0x1   :  { %2899 = sst [smem:[#allocation3_spill]] %s2885_s0 }
   0x2   :  { %2900 = sst [smem:[#allocation4_spill]] %s2886_s1 }
   0x3   :  { %2901 = sst [smem:[#allocation5_spill]] %s2887_s2 }
   0x4   :  { %s2492_s25 = smov 0   ;;  %s2494_s26 = smov 0  }
   0x5   :  { %s2496_s27 = smov 0  }
   0x6 LB: > { %s1869_s28 = sadd.s32 4294967295, %s2385_s27   ;;  %s2505_s29 = sadd.s32 1, %s2385_s27   ;;  %s2385_s27 = sphi %s2496_s27, %s2911_s27   ;;  %s2381_s26 = sphi %s2494_s26, %s2910_s26   ;;  %s2377_s25 = sphi %s2492_s25, %s2909_s25  }
   0x7   : > { %p328_p0 = scmp.lt.s32.totalorder %s2385_s27, 1  ;;  %p330_p1 = scmp.lt.s32.totalorder %s2505_s29, 1 }
   0x8   : > { %s335_s30 = sadd.s32 1, %s2381_s26  ;;  %p345_p2 = scmp.ne.s32.totalorder %s2381_s26, %s2377_s25 }
   0x9   : > { %s329_s14 = scalar_select %p328_p0, %s2385_s27, 1 }
   0xa   : > { %s331_s15 = scalar_select %p330_p1, %s2505_s29, 1 }
   0xb   : > { %p346_p3 = scmp.eq.s32.totalorder %s1869_s28, 1  ;;  %p1873_p4 = scmp.ge.s32.totalorder %s2385_s27, 1 }
   0xc   : > { %s332_s16 = ssub.s32 %s329_s14, %s331_s15  ;;  %p434_p5 = scmp.lt.s32.totalorder %s2385_s27, 3 }
   0xd   : > { %p333_p6 = scmp.eq.s32.totalorder %s332_s16, 0  ;;  %p2512_p7 = por %p346_p3, %p345_p2 }
   0xe   : > { %p435_p8 = pnand %p1873_p4, %p434_p5 }
   0xf   : > { %s2517_s18 = scalar_select %p333_p6, %s2381_s26, %s335_s30  }
  0x10   : > { %438 = sbr.rel (%p435_p8) target bundleno = 810 (0x32a), region = 68  ;;  %s2903_s2 = sld [smem:[#allocation5_spill]] (!%p435_p8)  ;;  %v776_v1 = vld [vmem:[%s2889_s4] sm:$0xff] (!%p435_p8)  ;;  %v777_v2 = vld [vmem:[%s2889_s4 + $0x8] sm:$0xff] (!%p435_p8)  ;;  %vm566_vm0 = vcmask (!%p435_p8), 64512   ;;  %v2419_v20 = vmov (!%p435_p8), 0.0|0.0  }
  0x11   : > { %p497_p9 = scmp.lt.s32.totalorder (!%p435_p8), %s1869_s28, 1  ;;  %v2206_v3 = vpack.c.bf16 (!%p435_p8), %v777_v2, %v776_v1  ;;  %s2904_s0 = sld [smem:[#allocation3_spill]] (!%p435_p8)  ;;  %v995_v21 = vld [vmem:[%s2891_s6] sm:$0xff] (!%p435_p8)  ;;  %v996_v22 = vld [vmem:[%s2891_s6 + $0x8] sm:$0xff] (!%p435_p8)  ;;  %vm785_vm1 = vcmask (!%p435_p8), 130048   ;;  %v1240_v39 = vld [vmem:[%s2893_s8 + $0x10] sm:$0xff] (!%p435_p8) }
  0x12   : > { %v2210_v23 = vpack.c.bf16 (!%p435_p8), %v996_v22, %v995_v21  ;;  %v2584_v24 = vld [vmem:[%s2888_s3] ss:$0 sm:$0xff] (!%p435_p8)  ;;  %v1239_v29 = vld [vmem:[%s2893_s8 + $0x8] sm:$0xff] (!%p435_p8)  ;;  %v1241_v40 = vld [vmem:[%s2893_s8 + $0x18] sm:$0xff] (!%p435_p8)  ;;  %s2905_s1 = sld [smem:[#allocation4_spill]] (!%p435_p8)  ;;  %vm2420_vm2 = vmmov (!%p435_p8), 0  }
  0x13   : > { %v1238_v28 = vld [vmem:[%s2893_s8] sm:$0xff] (!%p435_p8)  ;;  %v2218_v46 = vpack.c.bf16 (!%p435_p8), %v1241_v40, %v1240_v39  ;;  %vm1249_vm3 = vcmask (!%p435_p8), 261120   ;;  %v1398_v39 = vld [vmem:[%s2895_s10 + $0x10] sm:$0xff] (!%p435_p8)  ;;  %v1399_v40 = vld [vmem:[%s2895_s10 + $0x18] sm:$0xff] (!%p435_p8)  ;;  %vm1411_vm4 = vcmask (!%p435_p8), 523264  }
  0x14   : > { %v2215_v35 = vpack.c.bf16 (!%p435_p8), %v1239_v29, %v1238_v28 }
  0x16   : > { %v558_v0 = vld [vmem:[%s2903_s2] sm:$0xff] (!%p435_p8) }
  0x17   : > { %2046 = vmatprep.subr.mxu0 %v558_v0  ;;  %2232 = vmatprep.subr.mxu1 %v558_v0  ;;  %s2913_s28 = smov (!%p497_p9, %s1869_s28), 1 }
  0x18   : > { %2047 = vmatpush3.msra.mxu0 %v558_v0  ;;  %2233 = vmatpush3.msra.mxu1 %v558_v0  ;;  %s1874_s27 = sshll.u32 %s2913_s28, 4  ;;  %s2618_s24 = smul.u32 9, %s2913_s28 }
  0x19   : > { %2207 = vmatprep.subr.bf16.mxu1 %v2206_v3  ;;  %p500_p10 = scmp.lt.s32.totalorder %s1874_s27, 31  ;;  %2211 = vmatprep.subr.bf16.mxu0 %v2210_v23 }
  0x1a   : > { %p514_p11 = scmp.lt.s32.totalorder %s2618_s24, 16 }
  0x1b   : > { %s2915_s27 = smov (!%p500_p10, %s1874_s27), 31 }
  0x1c   : > { %s1875_s30 = sshll.u32 %s2915_s27, 3  ;;  %s494_s27 = sand.u32 1, %s2377_s25  }
  0x1d   : > { %s2539_s16 = scalar_lea.vmem %s2904_s0, %s1875_s30  ;;  %s2768_s21 = scalar_lea.vmem %s2897_s12, %s1875_s30 }
  0x1e   : > { %v542_v4 = vld [vmem:[%s2539_s16] sm:$0xff]  ;;  %v543_v5 = vld [vmem:[%s2539_s16 + $0x8] sm:$0xff]  ;;  %v544_v6 = vld [vmem:[%s2539_s16 + $0x10] sm:$0xff]  ;;  %s515_s14 = scalar_select %p514_p11, %s2618_s24, 16 }
  0x1f   : > { %2048 = vmatprep.mubr.msk.f32.mxu0 %vm566_vm0, %v542_v4  ;;  %v550_v7 = vld [vmem:[%s2539_s16 + $0x40] sm:$0xff]  ;;  %v545_v8 = vld [vmem:[%s2539_s16 + $0x18] sm:$0xff]  ;;  %v551_v9 = vld [vmem:[%s2539_s16 + $0x48] sm:$0xff]  ;;  %s2234_s30 = smul.u32 72, %s494_s27 }
  0x20   : > { %2049 = vmatmul.mubr.msk.f32.vlgmr.msra.gmra.mrb[0].mxu0 %vm566_vm0, %v543_v5  ;;  %2060 = vmatprep.mubr.msk.f32.mxu1 %vm566_vm0, %v550_v7  ;;  %v552_v10 = vld [vmem:[%s2539_s16 + $0x50] sm:$0xff]  ;;  %v546_v11 = vld [vmem:[%s2539_s16 + $0x20] sm:$0xff]  ;;  %v553_v12 = vld [vmem:[%s2539_s16 + $0x58] sm:$0xff]  ;;  %s1876_s15 = sshll.u32 %s515_s14, 3  ;;  %s1590_s14 = ssub.s32 (%p2512_p7), 17, %s2618_s24 }
  0x21   : > { %2051 = vmatprep.mubr.msk.f32.mxu0 %vm566_vm0, %v544_v6  ;;  %2061 = vmatmul.mubr.msk.f32.vlgmr.msra.gmra.mrb[0].mxu1 %vm566_vm0, %v551_v9  ;;  %v554_v13 = vld [vmem:[%s2539_s16 + $0x60] sm:$0xff]  ;;  %v547_v14 = vld [vmem:[%s2539_s16 + $0x28] sm:$0xff]  ;;  %v548_v15 = vld [vmem:[%s2539_s16 + $0x30] sm:$0xff]  ;;  %s517_s20 = scalar_lea.vmem %s2905_s1, %s1876_s15  ;;  %s2806_s25 = scalar_lea.vmem [#allocation2], %s2234_s30  }
  0x22   : > { %2063 = vmatprep.mubr.msk.f32.mxu1 %vm566_vm0, %v552_v10  ;;  %2209 = vmatpush3.bf16.msra.mxu1 %v2206_v3  ;;  %v555_v16 = vld [vmem:[%s2539_s16 + $0x68] sm:$0xff]  ;;  %v556_v17 = vld [vmem:[%s2539_s16 + $0x70] sm:$0xff]  ;;  %v549_v18 = vld [vmem:[%s2539_s16 + $0x38] sm:$0xff]  ;;  %s1962_s15 = smul.u32 (%p2512_p7), 72, %s2913_s28  ;;  %p1591_p12 = scmp.lt.s32.totalorder (%p2512_p7), %s1590_s14, 9 }
  0x23   : > { %v557_v19 = vld [vmem:[%s2539_s16 + $0x78] sm:$0xff]  ;;  %2214 = vmatprep.subr.bf16.mxu1 %v2419_v20  ;;  %2213 = vmatpush3.bf16.msra.mxu0 %v2210_v23  ;;  %v1233_v21 = vld [vmem:[%s517_s20 + $0x20] sm:$0xff]  ;;  %v1234_v22 = vld [vmem:[%s517_s20 + $0x28] sm:$0xff] }
  0x24   : > { %2052 = vmatmul.mubr.msk.f32.gmra.mrb[2].mxu0 %vm566_vm0, %v545_v8  ;;  %2220 = vmatprep.subr.bf16.mxu0 %v2419_v20  ;;  %v1235_v23 = vld [vmem:[%s517_s20 + $0x30] sm:$0xff] }
  0x25   : > { %2054 = vmatprep.mubr.msk.f32.mxu0 %vm566_vm0, %v546_v11  ;;  %2064 = vmatmul.mubr.msk.f32.gmra.mrb[2].mxu1 %vm566_vm0, %v553_v12 }
  0x26   : > { %2066 = vmatprep.mubr.msk.f32.mxu1 %vm566_vm0, %v554_v13 }
  0x28   : > { %2055 = vmatmul.mubr.msk.f32.gmra.mrb[4].mxu0 %vm566_vm0, %v547_v14 }
  0x29   : > { %2057 = vmatprep.mubr.msk.f32.mxu0 %vm566_vm0, %v548_v15  ;;  %2067 = vmatmul.mubr.msk.f32.gmra.mrb[4].mxu1 %vm566_vm0, %v555_v16  ;;  %v2421_v15 = vmov 0.0   ;;  %v1229_v16 = vld [vmem:[%s517_s20] sm:$0xff] }
  0x2a   : > { %2069 = vmatprep.mubr.msk.f32.mxu1 %vm566_vm0, %v556_v17  ;;  %v1230_v17 = vld [vmem:[%s517_s20 + $0x8] sm:$0xff] }
  0x2c   : > { %2058 = vmatmul.mubr.msk.f32.gmra.mrb[6].mxu0 %vm566_vm0, %v549_v18  ;;  %v1231_v18 = vld [vmem:[%s517_s20 + $0x10] sm:$0xff] }
  0x2d   : > { %2070 = vmatmul.mubr.msk.f32.gmra.mrb[6].mxu1 %vm566_vm0, %v557_v19  ;;  %v1232_v19 = vld [vmem:[%s517_s20 + $0x18] sm:$0xff] }
  0xf3   : > { %v2050_v25 = vpop.f32.mrb[0].mxu0 }
  0xf4   : > { %v687_v26 = vadd.f32 %v2050_v25, %v2584_v24  ;;  %v681_v27 = vpop.f32.mrb[1].mxu0  ;;  %v2062_v31 = vpop.f32.mrb[0].mxu1  ;;  %v1237_v25 = vld [vmem:[%s517_s20 + $0x40] sm:$0xff] }
  0xf5   : > { %v682_v30 = vadd.f32 %v2584_v24, %v681_v27  ;;  %v721_v32 = vpop.f32.mrb[1].mxu1  ;;  %v727_v2 = vadd.f32 %v2062_v31, %v2584_v24  ;;  %v1397_v31 = vld [vmem:[%s2895_s10 + $0x8] sm:$0xff] }
  0xf6   : > { %v761_v36 = vmax.f32 %v687_v26, 0.0  ;;  %v722_v55 = vadd.f32 %v2584_v24, %v721_v32  ;;  %v2669_v26 = vld [vmem:[%s2890_s5] ss:$0 sm:$0xff] }
  0xf7   : > { %v760_v33 = vmax.f32 %v682_v30, 0.0  ;;  %v2053_v34 = vpop.f32.mrb[2].mxu0  ;;  %v769_v5 = vmax.f32 %v727_v2, 0.0  ;;  %v1396_v30 = vld [vmem:[%s2895_s10] sm:$0xff] }
  0xf8   : > { %v697_v37 = vadd.f32 %v2053_v34, %v2584_v24  ;;  %v691_v38 = vpop.f32.mrb[3].mxu0  ;;  %v2065_v42 = vpop.f32.mrb[2].mxu1  ;;  %v768_v63 = vmax.f32 %v722_v55, 0.0 }
  0xf9   : > { %v692_v41 = vadd.f32 %v2584_v24, %v691_v38  ;;  %2076 = vmatprep.mubr.msk.f32.mxu1 %vm785_vm1, %v760_v33  ;;  %v731_v43 = vpop.f32.mrb[3].mxu1  ;;  %v737_v6 = vadd.f32 %v2065_v42, %v2584_v24 }
  0xfa   : > { %2077 = vmatmul.mubr.msk.f32.vlgmr.msra.gmra.mrb[8].mxu1 %vm785_vm1, %v761_v36  ;;  %v763_v47 = vmax.f32 %v697_v37, 0.0  ;;  %v732_v0 = vadd.f32 %v2584_v24, %v731_v43 }
  0xfb   : > { %v762_v44 = vmax.f32 %v692_v41, 0.0  ;;  %v2056_v45 = vpop.f32.mrb[4].mxu0  ;;  %2216 = vmatpush3.bf16.msra.mxu1 %v2215_v35  ;;  %v771_v9 = vmax.f32 %v737_v6, 0.0  ;;  %v2221_v35 = vpack.c.bf16 %v1397_v31, %v1396_v30 }
  0xfc   : > { %v707_v48 = vadd.f32 %v2056_v45, %v2584_v24  ;;  %v701_v49 = vpop.f32.mrb[5].mxu0  ;;  %2217 = vmatprep.subr.bf16.mxu1 %v2419_v20  ;;  %v2068_v51 = vpop.f32.mrb[4].mxu1  ;;  %v770_v3 = vmax.f32 %v732_v0, 0.0 }
  0xfd   : > { %v702_v50 = vadd.f32 %v2584_v24, %v701_v49  ;;  %2079 = vmatprep.mubr.msk.f32.mxu1 %vm785_vm1, %v762_v44  ;;  %v741_v52 = vpop.f32.mrb[5].mxu1  ;;  %v747_v10 = vadd.f32 %v2068_v51, %v2584_v24  ;;  %v2224_v44 = vpack.c.bf16 %v1399_v40, %v1398_v39  ;;  %v1401_v49 = vld [vmem:[%s2895_s10 + $0x28] sm:$0xff] }
  0xfe   : > { %2080 = vmatmul.mubr.msk.f32.gmra.mrb[10].mxu1 %vm785_vm1, %v763_v47  ;;  %v765_v56 = vmax.f32 %v707_v48, 0.0  ;;  %v742_v4 = vadd.f32 %v2584_v24, %v741_v52  ;;  %v1400_v48 = vld [vmem:[%s2895_s10 + $0x20] sm:$0xff] }
  0xff   : > { %v764_v53 = vmax.f32 %v702_v50, 0.0  ;;  %v2059_v54 = vpop.f32.mrb[6].mxu0  ;;  %2219 = vmatpush3.bf16.msra.mxu1 %v2218_v46  ;;  %v773_v12 = vmax.f32 %v747_v10, 0.0 }
 0x100   : > { %v717_v57 = vadd.f32 %v2059_v54, %v2584_v24  ;;  %v711_v58 = vpop.f32.mrb[7].mxu0  ;;  %v2071_v60 = vpop.f32.mrb[6].mxu1  ;;  %v772_v7 = vmax.f32 %v742_v4, 0.0 }
 0x101   : > { %v712_v59 = vadd.f32 %v2584_v24, %v711_v58  ;;  %2082 = vmatprep.mubr.msk.f32.mxu1 %vm785_vm1, %v764_v53  ;;  %v751_v61 = vpop.f32.mrb[7].mxu1  ;;  %v757_v13 = vadd.f32 %v2071_v60, %v2584_v24  ;;  %v2227_v53 = vpack.c.bf16 %v1401_v49, %v1400_v48  ;;  %v1403_v58 = vld [vmem:[%s2895_s10 + $0x38] sm:$0xff] }
 0x102   : > { %2083 = vmatmul.mubr.msk.f32.gmra.mrb[12].mxu1 %vm785_vm1, %v765_v56  ;;  %v767_v1 = vmax.f32 %v717_v57, 0.0  ;;  %v752_v8 = vadd.f32 %v2584_v24, %v751_v61  ;;  %v1236_v24 = vld [vmem:[%s517_s20 + $0x38] sm:$0xff]  ;;  %v1402_v57 = vld [vmem:[%s2895_s10 + $0x30] sm:$0xff]  ;;  %s2833_s20 = scalar_lea.vmem (%p2512_p7), %s2898_s13, %s1962_s15  }
 0x103   : > { %v766_v62 = vmax.f32 %v712_v59, 0.0  ;;  %v775_v14 = vmax.f32 %v757_v13, 0.0 }
 0x104   : > { %v774_v11 = vmax.f32 %v752_v8, 0.0 }
 0x105   : > { %2085 = vmatprep.mubr.msk.f32.mxu1 %vm785_vm1, %v766_v62  ;;  %v2230_v62 = vpack.c.bf16 %v1403_v58, %v1402_v57 }
 0x106   : > { %2086 = vmatmul.mubr.msk.f32.gmra.mrb[14].mxu1 %vm785_vm1, %v767_v1 }
 0x107   : > { %2088 = vmatprep.mubr.msk.f32.mxu1 %vm785_vm1, %v768_v63 }
 0x10a   : > { %2089 = vmatmul.mubr.msk.f32.gmra.mrb[16].mxu1 %vm785_vm1, %v769_v5 }
 0x10b   : > { %2091 = vmatprep.mubr.msk.f32.mxu1 %vm785_vm1, %v770_v3 }
 0x10e   : > { %2092 = vmatmul.mubr.msk.f32.gmra.mrb[18].mxu1 %vm785_vm1, %v771_v9 }
 0x10f   : > { %2094 = vmatprep.mubr.msk.f32.mxu1 %vm785_vm1, %v772_v7 }
 0x112   : > { %2095 = vmatmul.mubr.msk.f32.gmra.mrb[20].mxu1 %vm785_vm1, %v773_v12 }
 0x113   : > { %2097 = vmatprep.mubr.msk.f32.mxu1 %vm785_vm1, %v774_v11 }
 0x116   : > { %2098 = vmatmul.mubr.msk.f32.gmra.mrb[22].mxu1 %vm785_vm1, %v775_v14 }
 0x117   : > { %2136 = vmatprep.mubr.msk.f32.mxu1 %vm2420_vm2, %v2421_v15 }
 0x11a   : > { %2137 = vmatmul.mubr.msk.f32.vlgmr.msra.gmra.mrb[24].mxu1 %vm1249_vm3, %v1229_v16 }
 0x11b   : > { %2139 = vmatprep.mubr.msk.f32.mxu1 %vm2420_vm2, %v2421_v15 }
 0x11e   : > { %2140 = vmatmul.mubr.msk.f32.gmra.mrb[26].mxu1 %vm1249_vm3, %v1230_v17 }
 0x11f   : > { %2142 = vmatprep.mubr.msk.f32.mxu1 %vm2420_vm2, %v2421_v15 }
 0x122   : > { %2143 = vmatmul.mubr.msk.f32.gmra.mrb[28].mxu1 %vm1249_vm3, %v1231_v18 }
 0x123   : > { %2145 = vmatprep.mubr.msk.f32.mxu1 %vm2420_vm2, %v2421_v15 }
 0x126   : > { %2146 = vmatmul.mubr.msk.f32.gmra.mrb[30].mxu1 %vm1249_vm3, %v1232_v19 }
 0x127   : > { %2148 = vmatprep.mubr.msk.f32.mxu1 %vm2420_vm2, %v2421_v15 }
 0x12a   : > { %2149 = vmatmul.mubr.msk.f32.gmra.mrb[32].mxu1 %vm1249_vm3, %v1233_v21 }
 0x12b   : > { %2151 = vmatprep.mubr.msk.f32.mxu1 %vm2420_vm2, %v2421_v15 }
 0x12e   : > { %2152 = vmatmul.mubr.msk.f32.gmra.mrb[34].mxu1 %vm1249_vm3, %v1234_v22  ;;  %v1930_v22 = vld [vmem:[%s2894_s9] ss:$0 sm:$0xff] }
 0x12f   : > { %2154 = vmatprep.mubr.msk.f32.mxu1 %vm2420_vm2, %v2421_v15 }
 0x132   : > { %2155 = vmatmul.mubr.msk.f32.gmra.mrb[36].mxu1 %vm1249_vm3, %v1235_v23 }
 0x133   : > { %2157 = vmatprep.mubr.msk.f32.mxu1 %vm2420_vm2, %v2421_v15 }
 0x136   : > { %2158 = vmatmul.mubr.msk.f32.gmra.mrb[38].mxu1 %vm1249_vm3, %v1236_v24 }
 0x137   : > { %2160 = vmatprep.mubr.msk.f32.mxu1 %vm2420_vm2, %v2421_v15 }
 0x13a   : > { %2161 = vmatmul.mubr.msk.f32.gmra.mrb[40].mxu1 %vm1249_vm3, %v1237_v25 }
 0x1cd   : > { %v2078_v27 = vpop.f32.mrb[8].mxu1 }
 0x1ce   : > { %v906_v28 = vadd.f32 %v2078_v27, %v2669_v26  ;;  %v900_v29 = vpop.f32.mrb[9].mxu1 }
 0x1cf   : > { %v901_v32 = vadd.f32 %v2669_v26, %v900_v29 }
 0x1d0   : > { %v980_v36 = vmax.f32 %v906_v28, 0.0 }
 0x1d1   : > { %v979_v33 = vmax.f32 %v901_v32, 0.0  ;;  %v2081_v34 = vpop.f32.mrb[10].mxu1 }
 0x1d2   : > { %v916_v37 = vadd.f32 %v2081_v34, %v2669_v26  ;;  %v910_v38 = vpop.f32.mrb[11].mxu1 }
 0x1d3   : > { %v911_v41 = vadd.f32 %v2669_v26, %v910_v38  ;;  %2104 = vmatprep.mubr.msk.f32.mxu0 %vm785_vm1, %v979_v33 }
 0x1d4   : > { %2105 = vmatmul.mubr.msk.f32.vlgmr.msra.gmra.mrb[8].mxu0 %vm785_vm1, %v980_v36  ;;  %v982_v45 = vmax.f32 %v916_v37, 0.0 }
 0x1d5   : > { %v981_v42 = vmax.f32 %v911_v41, 0.0  ;;  %2222 = vmatpush3.bf16.msra.mxu0 %v2221_v35  ;;  %v2084_v43 = vpop.f32.mrb[12].mxu1 }
 0x1d6   : > { %v926_v46 = vadd.f32 %v2084_v43, %v2669_v26  ;;  %v920_v47 = vpop.f32.mrb[13].mxu1  ;;  %2223 = vmatprep.subr.bf16.mxu0 %v2419_v20 }
 0x1d7   : > { %v921_v50 = vadd.f32 %v2669_v26, %v920_v47  ;;  %2107 = vmatprep.mubr.msk.f32.mxu0 %vm785_vm1, %v981_v42 }
 0x1d8   : > { %2108 = vmatmul.mubr.msk.f32.gmra.mrb[10].mxu0 %vm785_vm1, %v982_v45  ;;  %v984_v54 = vmax.f32 %v926_v46, 0.0 }
 0x1d9   : > { %v983_v51 = vmax.f32 %v921_v50, 0.0  ;;  %v2087_v52 = vpop.f32.mrb[14].mxu1  ;;  %2225 = vmatpush3.bf16.msra.mxu0 %v2224_v44 }
 0x1da   : > { %v936_v55 = vadd.f32 %v2087_v52, %v2669_v26  ;;  %v930_v56 = vpop.f32.mrb[15].mxu1  ;;  %2226 = vmatprep.subr.bf16.mxu0 %v2419_v20 }
 0x1db   : > { %v931_v59 = vadd.f32 %v2669_v26, %v930_v56  ;;  %2110 = vmatprep.mubr.msk.f32.mxu0 %vm785_vm1, %v983_v51 }
 0x1dc   : > { %2111 = vmatmul.mubr.msk.f32.gmra.mrb[12].mxu0 %vm785_vm1, %v984_v54  ;;  %v986_v63 = vmax.f32 %v936_v55, 0.0 }
 0x1dd   : > { %v985_v60 = vmax.f32 %v931_v59, 0.0  ;;  %v2090_v61 = vpop.f32.mrb[16].mxu1  ;;  %2228 = vmatpush3.bf16.msra.mxu0 %v2227_v53 }
 0x1de   : > { %v946_v0 = vadd.f32 %v2090_v61, %v2669_v26  ;;  %v940_v1 = vpop.f32.mrb[17].mxu1  ;;  %2229 = vmatprep.subr.bf16.mxu0 %v2419_v20  ;;  %v1913_v61 = vld [vmem:[%s2892_s7] ss:$0 sm:$0xff] }
 0x1df   : > { %v941_v2 = vadd.f32 %v2669_v26, %v940_v1  ;;  %2113 = vmatprep.mubr.msk.f32.mxu0 %vm785_vm1, %v985_v60 }
 0x1e0   : > { %2114 = vmatmul.mubr.msk.f32.gmra.mrb[14].mxu0 %vm785_vm1, %v986_v63  ;;  %v988_v5 = vmax.f32 %v946_v0, 0.0 }
 0x1e1   : > { %v987_v3 = vmax.f32 %v941_v2, 0.0  ;;  %v2093_v4 = vpop.f32.mrb[18].mxu1  ;;  %2231 = vmatpush3.bf16.msra.mxu0 %v2230_v62 }
 0x1e2   : > { %v956_v6 = vadd.f32 %v2093_v4, %v2669_v26  ;;  %v950_v7 = vpop.f32.mrb[19].mxu1 }
 0x1e3   : > { %v951_v8 = vadd.f32 %v2669_v26, %v950_v7  ;;  %2116 = vmatprep.mubr.msk.f32.mxu0 %vm785_vm1, %v987_v3 }
 0x1e4   : > { %2117 = vmatmul.mubr.msk.f32.gmra.mrb[16].mxu0 %vm785_vm1, %v988_v5  ;;  %v990_v10 = vmax.f32 %v956_v6, 0.0 }
 0x1e5   : > { %v989_v20 = vmax.f32 %v951_v8, 0.0  ;;  %v2096_v9 = vpop.f32.mrb[20].mxu1 }
 0x1e6   : > { %v966_v11 = vadd.f32 %v2096_v9, %v2669_v26  ;;  %v960_v12 = vpop.f32.mrb[21].mxu1 }
 0x1e7   : > { %v961_v13 = vadd.f32 %v2669_v26, %v960_v12  ;;  %2119 = vmatprep.mubr.msk.f32.mxu0 %vm785_vm1, %v989_v20 }
 0x1e8   : > { %2120 = vmatmul.mubr.msk.f32.gmra.mrb[18].mxu0 %vm785_vm1, %v990_v10  ;;  %v992_v17 = vmax.f32 %v966_v11, 0.0 }
 0x1e9   : > { %v991_v14 = vmax.f32 %v961_v13, 0.0  ;;  %v2099_v16 = vpop.f32.mrb[22].mxu1 }
 0x1ea   : > { %v976_v18 = vadd.f32 %v2099_v16, %v2669_v26  ;;  %v970_v19 = vpop.f32.mrb[23].mxu1 }
 0x1eb   : > { %v971_v21 = vadd.f32 %v2669_v26, %v970_v19  ;;  %2122 = vmatprep.mubr.msk.f32.mxu0 %vm785_vm1, %v991_v14 }
 0x1ec   : > { %2123 = vmatmul.mubr.msk.f32.gmra.mrb[20].mxu0 %vm785_vm1, %v992_v17  ;;  %v994_v25 = vmax.f32 %v976_v18, 0.0 }
 0x1ed   : > { %v993_v23 = vmax.f32 %v971_v21, 0.0  ;;  %v1343_v24 = vpop.f32.mrb[24].mxu1 }
 0x1ee   : > { %v1344_v27 = vadd.f32 %v1930_v22, %v1343_v24  ;;  %v2138_v28 = vpop.f32.mrb[25].mxu1 }
 0x1ef   : > { %2125 = vmatprep.mubr.msk.f32.mxu0 %vm785_vm1, %v993_v23 }
 0x1f0   : > { %v1387_v29 = vmax.f32 %v1344_v27, 0.0  ;;  %2126 = vmatmul.mubr.msk.f32.gmra.mrb[22].mxu0 %vm785_vm1, %v994_v25 }
 0x1f1   : > { %v1348_v30 = vpop.f32.mrb[26].mxu1  ;;  %2179 = vmatprep.mubr.msk.f32.mxu0 %vm2420_vm2, %v2421_v15 }
 0x1f2   : > { %v1349_v26 = vadd.f32 %v1930_v22, %v1348_v30  ;;  %v2141_v31 = vpop.f32.mrb[27].mxu1 }
 0x1f4   : > { %v1388_v32 = vmax.f32 %v1349_v26, 0.0  ;;  %2180 = vmatmul.mubr.msk.f32.vlgmr.msra.gmra.mrb[24].mxu0 %vm1411_vm4, %v1387_v29 }
 0x1f5   : > { %v1353_v33 = vpop.f32.mrb[28].mxu1  ;;  %2182 = vmatprep.mubr.msk.f32.mxu0 %vm2420_vm2, %v2421_v15 }
 0x1f6   : > { %v1354_v34 = vadd.f32 %v1930_v22, %v1353_v33  ;;  %v2144_v35 = vpop.f32.mrb[29].mxu1 }
 0x1f8   : > { %v1389_v36 = vmax.f32 %v1354_v34, 0.0  ;;  %2183 = vmatmul.mubr.msk.f32.gmra.mrb[26].mxu0 %vm1411_vm4, %v1388_v32 }
 0x1f9   : > { %v1358_v37 = vpop.f32.mrb[30].mxu1  ;;  %2185 = vmatprep.mubr.msk.f32.mxu0 %vm2420_vm2, %v2421_v15 }
 0x1fa   : > { %v1359_v38 = vadd.f32 %v1930_v22, %v1358_v37  ;;  %v2147_v39 = vpop.f32.mrb[31].mxu1 }
 0x1fc   : > { %v1390_v40 = vmax.f32 %v1359_v38, 0.0  ;;  %2186 = vmatmul.mubr.msk.f32.gmra.mrb[28].mxu0 %vm1411_vm4, %v1389_v36 }
 0x1fd   : > { %v1363_v41 = vpop.f32.mrb[32].mxu1  ;;  %2188 = vmatprep.mubr.msk.f32.mxu0 %vm2420_vm2, %v2421_v15 }
 0x1fe   : > { %v1364_v42 = vadd.f32 %v1930_v22, %v1363_v41  ;;  %v2150_v43 = vpop.f32.mrb[33].mxu1 }
 0x200   : > { %v1391_v44 = vmax.f32 %v1364_v42, 0.0  ;;  %2189 = vmatmul.mubr.msk.f32.gmra.mrb[30].mxu0 %vm1411_vm4, %v1390_v40 }
 0x201   : > { %v1368_v45 = vpop.f32.mrb[34].mxu1  ;;  %2191 = vmatprep.mubr.msk.f32.mxu0 %vm2420_vm2, %v2421_v15 }
 0x202   : > { %v1369_v46 = vadd.f32 %v1930_v22, %v1368_v45  ;;  %v2153_v47 = vpop.f32.mrb[35].mxu1 }
 0x204   : > { %v1392_v48 = vmax.f32 %v1369_v46, 0.0  ;;  %2192 = vmatmul.mubr.msk.f32.gmra.mrb[32].mxu0 %vm1411_vm4, %v1391_v44  ;;  %v1940_v44 = vld [vmem:[%s2896_s11] ss:$0 sm:$0xff] }
 0x205   : > { %v1373_v49 = vpop.f32.mrb[36].mxu1  ;;  %2194 = vmatprep.mubr.msk.f32.mxu0 %vm2420_vm2, %v2421_v15 }
 0x206   : > { %v1374_v50 = vadd.f32 %v1930_v22, %v1373_v49  ;;  %v2156_v51 = vpop.f32.mrb[37].mxu1 }
 0x208   : > { %v1393_v52 = vmax.f32 %v1374_v50, 0.0  ;;  %2195 = vmatmul.mubr.msk.f32.gmra.mrb[34].mxu0 %vm1411_vm4, %v1392_v48 }
 0x209   : > { %v1378_v53 = vpop.f32.mrb[38].mxu1  ;;  %2197 = vmatprep.mubr.msk.f32.mxu0 %vm2420_vm2, %v2421_v15 }
 0x20a   : > { %v1379_v54 = vadd.f32 %v1930_v22, %v1378_v53  ;;  %v2159_v55 = vpop.f32.mrb[39].mxu1 }
 0x20c   : > { %v1394_v56 = vmax.f32 %v1379_v54, 0.0  ;;  %2198 = vmatmul.mubr.msk.f32.gmra.mrb[36].mxu0 %vm1411_vm4, %v1393_v52 }
 0x20d   : > { %v1383_v57 = vpop.f32.mrb[40].mxu1  ;;  %2200 = vmatprep.mubr.msk.f32.mxu0 %vm2420_vm2, %v2421_v15 }
 0x20e   : > { %v1384_v58 = vadd.f32 %v1930_v22, %v1383_v57  ;;  %v2162_v59 = vpop.f32.mrb[41].mxu1 }
 0x210   : > { %v1395_v60 = vmax.f32 %v1384_v58, 0.0  ;;  %2201 = vmatmul.mubr.msk.f32.gmra.mrb[38].mxu0 %vm1411_vm4, %v1394_v56 }
 0x211   : > { %2203 = vmatprep.mubr.msk.f32.mxu0 %vm2420_vm2, %v2421_v15 }
 0x214   : > { %2204 = vmatmul.mubr.msk.f32.gmra.mrb[40].mxu0 %vm1411_vm4, %v1395_v60 }
 0x2a7   : > { %v2106_v62 = vpop.f32.mrb[8].mxu0 }
 0x2a8   : > { %v1124_v63 = vadd.f32 %v2106_v62, %v1913_v61  ;;  %v1118_v0 = vpop.f32.mrb[9].mxu0 }
 0x2a9   : > { %v1119_v15 = vadd.f32 %v1913_v61, %v1118_v0 }
 0x2aa   : > { %v1198_v1 = vmax.f32 %v1124_v63, 0.0 }
 0x2ab   : > { %v1197_v2 = vmax.f32 %v1119_v15, 0.0  ;;  %v2109_v3 = vpop.f32.mrb[10].mxu0 }
 0x2ac   : > { %1214 = vst.msk [vmem:[%s2768_s21 + $0x8] sm:$0xff] %vm566_vm0, %v1198_v1  ;;  %v1134_v4 = vadd.f32 %v2109_v3, %v1913_v61  ;;  %v1128_v5 = vpop.f32.mrb[11].mxu0 }
 0x2ad   : > { %1213 = vst.msk [vmem:[%s2768_s21] sm:$0xff] %vm566_vm0, %v1197_v2  ;;  %v1129_v6 = vadd.f32 %v1913_v61, %v1128_v5 }
 0x2ae   : > { %v1200_v7 = vmax.f32 %v1134_v4, 0.0 }
 0x2af   : > { %v1199_v8 = vmax.f32 %v1129_v6, 0.0  ;;  %v2112_v20 = vpop.f32.mrb[12].mxu0 }
 0x2b0   : > { %1216 = vst.msk [vmem:[%s2768_s21 + $0x18] sm:$0xff] %vm566_vm0, %v1200_v7  ;;  %v1144_v9 = vadd.f32 %v2112_v20, %v1913_v61  ;;  %v1138_v10 = vpop.f32.mrb[13].mxu0 }
 0x2b1   : > { %1215 = vst.msk [vmem:[%s2768_s21 + $0x10] sm:$0xff] %vm566_vm0, %v1199_v8  ;;  %v1139_v11 = vadd.f32 %v1913_v61, %v1138_v10 }
 0x2b2   : > { %v1202_v12 = vmax.f32 %v1144_v9, 0.0 }
 0x2b3   : > { %v1201_v13 = vmax.f32 %v1139_v11, 0.0  ;;  %v2115_v14 = vpop.f32.mrb[14].mxu0 }
 0x2b4   : > { %1218 = vst.msk [vmem:[%s2768_s21 + $0x28] sm:$0xff] %vm566_vm0, %v1202_v12  ;;  %v1154_v16 = vadd.f32 %v2115_v14, %v1913_v61  ;;  %v1148_v17 = vpop.f32.mrb[15].mxu0 }
 0x2b5   : > { %1217 = vst.msk [vmem:[%s2768_s21 + $0x20] sm:$0xff] %vm566_vm0, %v1201_v13  ;;  %v1149_v18 = vadd.f32 %v1913_v61, %v1148_v17 }
 0x2b6   : > { %v1204_v19 = vmax.f32 %v1154_v16, 0.0 }
 0x2b7   : > { %v1203_v21 = vmax.f32 %v1149_v18, 0.0  ;;  %v2118_v22 = vpop.f32.mrb[16].mxu0 }
 0x2b8   : > { %1220 = vst.msk [vmem:[%s2768_s21 + $0x38] sm:$0xff] %vm566_vm0, %v1204_v19  ;;  %v1164_v23 = vadd.f32 %v2118_v22, %v1913_v61  ;;  %v1158_v24 = vpop.f32.mrb[17].mxu0 }
 0x2b9   : > { %1219 = vst.msk [vmem:[%s2768_s21 + $0x30] sm:$0xff] %vm566_vm0, %v1203_v21  ;;  %v1159_v25 = vadd.f32 %v1913_v61, %v1158_v24 }
 0x2ba   : > { %v1206_v27 = vmax.f32 %v1164_v23, 0.0 }
 0x2bb   : > { %v1205_v28 = vmax.f32 %v1159_v25, 0.0  ;;  %v2121_v29 = vpop.f32.mrb[18].mxu0 }
 0x2bc   : > { %1222 = vst.msk [vmem:[%s2768_s21 + $0x48] sm:$0xff] %vm566_vm0, %v1206_v27  ;;  %v1174_v30 = vadd.f32 %v2121_v29, %v1913_v61  ;;  %v1168_v26 = vpop.f32.mrb[19].mxu0 }
 0x2bd   : > { %1221 = vst.msk [vmem:[%s2768_s21 + $0x40] sm:$0xff] %vm566_vm0, %v1205_v28  ;;  %v1169_v31 = vadd.f32 %v1913_v61, %v1168_v26 }
 0x2be   : > { %v1208_v32 = vmax.f32 %v1174_v30, 0.0 }
 0x2bf   : > { %v1207_v33 = vmax.f32 %v1169_v31, 0.0  ;;  %v2124_v34 = vpop.f32.mrb[20].mxu0 }
 0x2c0   : > { %1224 = vst.msk [vmem:[%s2768_s21 + $0x58] sm:$0xff] %vm566_vm0, %v1208_v32  ;;  %v1184_v35 = vadd.f32 %v2124_v34, %v1913_v61  ;;  %v1178_v36 = vpop.f32.mrb[21].mxu0 }
 0x2c1   : > { %1223 = vst.msk [vmem:[%s2768_s21 + $0x50] sm:$0xff] %vm566_vm0, %v1207_v33  ;;  %v1179_v37 = vadd.f32 %v1913_v61, %v1178_v36 }
 0x2c2   : > { %v1210_v38 = vmax.f32 %v1184_v35, 0.0 }
 0x2c3   : > { %v1209_v39 = vmax.f32 %v1179_v37, 0.0  ;;  %v2127_v40 = vpop.f32.mrb[22].mxu0 }
 0x2c4   : > { %1226 = vst.msk [vmem:[%s2768_s21 + $0x68] sm:$0xff] %vm566_vm0, %v1210_v38  ;;  %v1194_v41 = vadd.f32 %v2127_v40, %v1913_v61  ;;  %v1188_v42 = vpop.f32.mrb[23].mxu0 }
 0x2c5   : > { %1225 = vst.msk [vmem:[%s2768_s21 + $0x60] sm:$0xff] %vm566_vm0, %v1209_v39  ;;  %v1189_v43 = vadd.f32 %v1913_v61, %v1188_v42 }
 0x2c6   : > { %v1212_v45 = vmax.f32 %v1194_v41, 0.0 }
 0x2c7   : > { %v1211_v46 = vmax.f32 %v1189_v43, 0.0  ;;  %v1505_v47 = vpop.f32.mrb[24].mxu0 }
 0x2c8   : > { %1228 = vst.msk [vmem:[%s2768_s21 + $0x78] sm:$0xff] %vm566_vm0, %v1212_v45  ;;  %v1506_v48 = vadd.f32 %v1940_v44, %v1505_v47  ;;  %v2181_v49 = vpop.f32.mrb[25].mxu0 }
 0x2c9   : > { %1227 = vst.msk [vmem:[%s2768_s21 + $0x70] sm:$0xff] %vm566_vm0, %v1211_v46 }
 0x2ca   : > { %v1549_v50 = vmax.f32 %v1506_v48, 0.0 }
 0x2cb   : > { %v1510_v51 = vpop.f32.mrb[26].mxu0 }
 0x2cc   : > { %1558 = vst.msk [vmem:[%s2806_s25] sm:$0xff] %vm785_vm1, %v1549_v50  ;;  %v1511_v52 = vadd.f32 %v1940_v44, %v1510_v51  ;;  %v2184_v53 = vpop.f32.mrb[27].mxu0 }
 0x2ce   : > { %v1550_v54 = vmax.f32 %v1511_v52, 0.0 }
 0x2cf   : > { %v1515_v55 = vpop.f32.mrb[28].mxu0 }
 0x2d0   : > { %1559 = vst.msk [vmem:[%s2806_s25 + $0x8] sm:$0xff] %vm785_vm1, %v1550_v54  ;;  %v1516_v56 = vadd.f32 %v1940_v44, %v1515_v55  ;;  %v2187_v57 = vpop.f32.mrb[29].mxu0 }
 0x2d2   : > { %v1551_v58 = vmax.f32 %v1516_v56, 0.0 }
 0x2d3   : > { %v1520_v59 = vpop.f32.mrb[30].mxu0 }
 0x2d4   : > { %1560 = vst.msk [vmem:[%s2806_s25 + $0x10] sm:$0xff] %vm785_vm1, %v1551_v58  ;;  %v1521_v60 = vadd.f32 %v1940_v44, %v1520_v59  ;;  %v2190_v61 = vpop.f32.mrb[31].mxu0 }
 0x2d6   : > { %v1552_v62 = vmax.f32 %v1521_v60, 0.0 }
 0x2d7   : > { %v1525_v63 = vpop.f32.mrb[32].mxu0 }
 0x2d8   : > { %1561 = vst.msk [vmem:[%s2806_s25 + $0x18] sm:$0xff] %vm785_vm1, %v1552_v62  ;;  %v1526_v0 = vadd.f32 %v1940_v44, %v1525_v63  ;;  %v2193_v15 = vpop.f32.mrb[33].mxu0 }
 0x2da   : > { %v1553_v1 = vmax.f32 %v1526_v0, 0.0 }
 0x2db   : > { %v1530_v2 = vpop.f32.mrb[34].mxu0 }
 0x2dc   : > { %1562 = vst.msk [vmem:[%s2806_s25 + $0x20] sm:$0xff] %vm785_vm1, %v1553_v1  ;;  %v1531_v3 = vadd.f32 %v1940_v44, %v1530_v2  ;;  %v2196_v4 = vpop.f32.mrb[35].mxu0 }
 0x2de   : > { %v1554_v5 = vmax.f32 %v1531_v3, 0.0 }
 0x2df   : > { %v1535_v6 = vpop.f32.mrb[36].mxu0 }
 0x2e0   : > { %1563 = vst.msk [vmem:[%s2806_s25 + $0x28] sm:$0xff] %vm785_vm1, %v1554_v5  ;;  %v1536_v7 = vadd.f32 %v1940_v44, %v1535_v6  ;;  %v2199_v8 = vpop.f32.mrb[37].mxu0 }
 0x2e2   : > { %v1555_v20 = vmax.f32 %v1536_v7, 0.0 }
 0x2e3   : > { %v1540_v9 = vpop.f32.mrb[38].mxu0 }
 0x2e4   : > { %1564 = vst.msk [vmem:[%s2806_s25 + $0x30] sm:$0xff] %vm785_vm1, %v1555_v20  ;;  %v1541_v10 = vadd.f32 %v1940_v44, %v1540_v9  ;;  %v2202_v11 = vpop.f32.mrb[39].mxu0 }
 0x2e6   : > { %v1556_v12 = vmax.f32 %v1541_v10, 0.0  ;;  %1586 = sbr.rel (!%p2512_p7) target bundleno = 810 (0x32a), region = 76 }
 0x2e7   : > { %v1545_v13 = vpop.f32.mrb[40].mxu0 }
 0x2e8   : > { %1565 = vst.msk [vmem:[%s2806_s25 + $0x38] sm:$0xff] %vm785_vm1, %v1556_v12  ;;  %v1546_v14 = vadd.f32 %v1940_v44, %v1545_v13  ;;  %v2205_v16 = vpop.f32.mrb[41].mxu0 }
 0x2ea   : > { %v1557_v17 = vmax.f32 %v1546_v14, 0.0 }
 0x2ec   : > { %1566 = vst.msk [vmem:[%s2806_s25 + $0x40] sm:$0xff] %vm785_vm1, %v1557_v17 }
 0x2ed   : > { %s2917_s14 = smov (!%p1591_p12, %s1590_s14), 9 }
 0x2ee   : > { %s1950_s21 = sshll.u32 %s2917_s14, 7 }
 0x2ef   : > { %p1953_p13 = scmp.eq.s32.totalorder %s1950_s21, 0 }
 0x2f0   : > { %2327 = sdivrem.u32 (!%p1953_p13), %s2917_s14, 9 }
 0x2f1   : > { %1599 = sbr.rel (%p1953_p13) target bundleno = 810 (0x32a), region = 80 }
 0x2f9   : > { %s2839_s17 = spop.drf %2327 }
 0x2fa   : > { %p1954_p0 = scmp.le.s32.totalorder %s2839_s17, 0 }
 0x2fb   : > { %s2906_s28 = smov (!%p1954_p0), %s2833_s20  ;;  %s2907_s24 = smov (!%p1954_p0), %s2806_s25 }
 0x2fc   : > { %1811 = sbr.rel (%p1954_p0) target bundleno = 781 (0x30d), region = 167  ;;  %s2848_s27 = smov (!%p1954_p0), 0  }
 0x2fd   : > { %s2850_s30 = smov (!%p1954_p0), 0  }
 0x303 LB: >> { %v1679_v18 = vld [vmem:[%s2393_s24] sm:$0xff]  ;;  %v1681_v19 = vld [vmem:[%s2393_s24 + $0x8] sm:$0xff]  ;;  %v1683_v21 = vld [vmem:[%s2393_s24 + $0x10] sm:$0xff]  ;;  %s1697_s22 = sadd.s32 1, %s2397_s27  ;;  %s1673_s30 = sadd.s32 1, %s2401_s30   ;;  %s2401_s30 = sphi %s2850_s30, %s1673_s30   ;;  %s2397_s27 = sphi %s2848_s27, %s2908_s27   ;;  %s2393_s24 = sphi %s2907_s24, %s1702_s24   ;;  %s2389_s28 = sphi %s2906_s28, %s1703_s28  }
 0x304   : >> { %1680 = vst [vmem:[%s2389_s28] sm:$0xff] %v1679_v18  ;;  %1682 = vst [vmem:[%s2389_s28 + $0x8] sm:$0xff] %v1681_v19  ;;  %v1685_v22 = vld [vmem:[%s2393_s24 + $0x18] sm:$0xff]  ;;  %v1687_v23 = vld [vmem:[%s2393_s24 + $0x20] sm:$0xff]  ;;  %p1698_p1 = scmp.ge.s32.totalorder %s1697_s22, %s2839_s17  ;;  %p1672_p2 = scmp.ge.s32.totalorder %s1673_s30, %s2839_s17 }
 0x305   : >> { %1684 = vst [vmem:[%s2389_s28 + $0x10] sm:$0xff] %v1683_v21  ;;  %v1689_v24 = vld [vmem:[%s2393_s24 + $0x28] sm:$0xff]  ;;  %1686 = vst [vmem:[%s2389_s28 + $0x18] sm:$0xff] %v1685_v22  ;;  %v1691_v25 = vld [vmem:[%s2393_s24 + $0x30] sm:$0xff] }
 0x306   : >> { %1688 = vst [vmem:[%s2389_s28 + $0x20] sm:$0xff] %v1687_v23  ;;  %1690 = vst [vmem:[%s2389_s28 + $0x28] sm:$0xff] %v1689_v24  ;;  %v1693_v27 = vld [vmem:[%s2393_s24 + $0x38] sm:$0xff]  ;;  %v1695_v28 = vld [vmem:[%s2393_s24 + $0x40] sm:$0xff]  ;;  %s2919_s22 = smov (%p1698_p1, %s1697_s22), 0  ;;  %1675 = sbr.rel (!%p1672_p2) target bundleno = 771 (0x303), region = 173 }
 0x307   : >> { %1692 = vst [vmem:[%s2389_s28 + $0x30] sm:$0xff] %v1691_v25  ;;  %1694 = vst [vmem:[%s2389_s28 + $0x38] sm:$0xff] %v1693_v27  ;;  %s1700_s23 = smul.u32 72, %s2919_s22  ;;  %s2908_s27 = smov %s2919_s22 }
 0x308   : >> { %1696 = vst [vmem:[%s2389_s28 + $0x40] sm:$0xff] %v1695_v28 }
 0x309   : >> { %s1702_s24 = scalar_lea.vmem %s2806_s25, %s1700_s23 [#allocation2]   ;;  %s1703_s28 = scalar_lea.vmem %s2833_s20, %s1700_s23  }
 0x30d PF: > { %2329 = sdivrem.u32 %s2917_s14, 9 }
 0x30e   : > { %s1955_s15 = smul.u32 72, %s2839_s17 }
 0x310   : > { %s1708_s16 = scalar_lea.vmem %s2806_s25, %s1955_s15 [#allocation2]   ;;  %s1710_s19 = scalar_lea.vmem %s2833_s20, %s1955_s15  }
 0x316   : > { %s2330_s21 = spop.drf %2329 }
 0x317   : > { %p1957_p3 = scmp.le.s32.totalorder %s2330_s21, 0 }
 0x318   : > { %s2403_s23 = smov (!%p1957_p3), %s1710_s19   ;;  %s2407_s0 = smov (!%p1957_p3), %s1708_s16  }
 0x319   : > { %1825 = sbr.rel (%p1957_p3) target bundleno = 810 (0x32a), region = 178  ;;  %s2411_s1 = smov (!%p1957_p3), 0  }
 0x31a   : > { %s2415_s2 = smov (!%p1957_p3), 0  }
 0x320 LB: >> { %v1720_v29 = vld [vmem:[%s2409_s0] sm:$0xff]  ;;  %s1722_s28 = sadd.s32 1, %s2413_s1  ;;  %s1714_s2 = sadd.s32 1, %s2417_s2   ;;  %s2417_s2 = sphi %s2415_s2, %s1714_s2   ;;  %s2413_s1 = sphi %s2411_s1, %s2412_s1   ;;  %s2409_s0 = sphi %s2407_s0, %s1727_s0   ;;  %s2405_s23 = sphi %s2403_s23, %s1728_s23  }
 0x321   : >> { %1721 = vst [vmem:[%s2405_s23] sm:$0xff] %v1720_v29  ;;  %p1723_p4 = scmp.ge.s32.totalorder %s1722_s28, %s2330_s21  ;;  %p1713_p5 = scmp.ge.s32.totalorder %s1714_s2, %s2330_s21 }
 0x323   : >> { %s2921_s28 = smov (%p1723_p4, %s1722_s28), 0  ;;  %1716 = sbr.rel (!%p1713_p5) target bundleno = 800 (0x320), region = 184 }
 0x324   : >> { %s1958_s25 = sshll.u32 %s2921_s28, 3  ;;  %s2412_s1 = smov %s2921_s28  }
 0x325   : >> { %s1727_s0 = scalar_lea.vmem %s1708_s16, %s1958_s25 [#allocation2]   ;;  %s1728_s23 = scalar_lea.vmem %s1710_s19, %s1958_s25  }
 0x32a PF: > { %p21_p6 = scmp.ge.s32.totalorder %s2505_s29, 4   ;;  %s2909_s25 = smov %s2381_s26 }
 0x32b   : > { %s2910_s26 = smov %s2517_s18  ;;  %s2911_s27 = smov %s2505_s29 }
 0x32c   :  { %23 = sbr.rel (!%p21_p6) target bundleno = 6 (0x6), region = 195 }

</bundles_post_ra>
